<compile_context>
chip_gen: v5e
topology: v5e:2x2
jax: 0.10.0
libtpu: 0.0.40
codegen_flags: <defaults>
</compile_context>

<pallas_src>
import functools

import jax
import jax.numpy as jnp
from jax.experimental import pallas as pl
from jax.experimental.pallas import tpu as pltpu


def _tv_loss_kernel(x_ref, partial_ref, *, width, block_rows, total_rows):
    """One grid step over a (block_rows, H*W) tile of flattened images.

    x_ref:       (block_rows, H*W) VMEM tile; each row is one flattened image.
    partial_ref: (1, 1) f32 SMEM block — this step's partial TV sum.
    """
    x = x_ref[...].astype(jnp.float32)
    hw = x.shape[1]

    # Column masks depend only on the lane position within the flattened row;
    # build them on a single (1, hw) row and let jnp.where broadcast over
    # sublanes (saves a full-tile int32 iota + mod + compare per element).
    col = jax.lax.broadcasted_iota(jnp.int32, (1, hw), 1)
    w_mask = (col % width) != 0   # left neighbour is in the same image row
    h_mask = col >= width         # up neighbour exists

    # W-direction diff: rolled_w[r, i] == x[r, i-1]  (lane roll on the XLU).
    # H-direction diff: rolled_h[r, i] == x[r, i-W].
    rolled_w = pltpu.roll(x, shift=1, axis=1)
    rolled_h = pltpu.roll(x, shift=width, axis=1)

    contrib = (jnp.where(w_mask, jnp.abs(x - rolled_w), 0.0)
               + jnp.where(h_mask, jnp.abs(x - rolled_h), 0.0))

    # Tail-row mask: the cdiv grid over-covers the row axis when block_rows
    # does not divide total_rows; out-of-bounds rows hold unspecified data and
    # must be zeroed.  Statically removed when the grid divides exactly.
    if total_rows % block_rows != 0:
        row = (jax.lax.broadcasted_iota(jnp.int32, (block_rows, 1), 0)
               + pl.program_id(0) * block_rows)
        contrib = jnp.where(row < total_rows, contrib, 0.0)

    partial_ref[0, 0] = jnp.sum(contrib)


def tv_loss_forward(x, strength):
    """Returns (input, loss) — TVLoss.forward returns `input` unchanged; the
    TV loss (PyTorch `self.loss`) is returned as an explicit second output."""
    b, c, h, w = x.shape
    bc = b * c
    hw = h * w
    itemsize = jnp.dtype(x.dtype).itemsize

    # Lane-dense flattening: every row of `xf` is one complete image, so both
    # diffs are intra-row and tiling over rows needs no halo.
    xf = x.reshape(bc, hw)

    # Footprint-aware tile sizing: per pipeline stage we hold the input tile
    # double-buffered at the input dtype plus ~6 f32 tile-sized temporaries
    # (upcast, two rolls, diffs/selects).  ~32 MiB working budget fits v7x's
    # 64 MiB VMEM and leaves v5e/v6e (128 MiB) with large tiles anyway.
    working_budget = 32 * 1024 * 1024
    per_row_bytes = hw * (2 * itemsize + 6 * 4)
    if 8 * per_row_bytes > working_budget:
        # TODO(synk): images whose flattened row exceeds the VMEM tile budget
        # need a second grid axis over the row with a W-lane halo.
        raise NotImplementedError(
            f"H*W={hw} too large for a single-row VMEM tile; "
            "row-splitting with halo is not implemented")
    rows_cap = pl.cdiv(bc, 8) * 8  # never more rows than the 8-rounded input
    block_rows = (working_budget // per_row_bytes) // 8 * 8
    block_rows = max(8, min(block_rows, rows_cap))
    num_blocks = pl.cdiv(bc, block_rows)
    # No wrapper-side padding: tail rows of the last block are masked in-kernel.

    kernel = functools.partial(
        _tv_loss_kernel, width=w, block_rows=block_rows, total_rows=bc)
    n_elems = bc * hw
    partials = pl.pallas_call(
        kernel,
        out_shape=jax.ShapeDtypeStruct((num_blocks, 1), jnp.float32),
        grid=(num_blocks,),
        in_specs=[pl.BlockSpec((block_rows, hw), lambda i: (i, 0))],
        out_specs=pl.BlockSpec(
            (1, 1), lambda i: (i, 0), memory_space=pltpu.MemorySpace.SMEM
        ),
        compiler_params=pltpu.CompilerParams(
            # Each step writes its own partial-sum block -> safe to parallelise
            # across TensorCores (v7x megacore).
            dimension_semantics=("parallel",),
            vmem_limit_bytes=48 * 1024 * 1024,
        ),
        cost_estimate=pl.CostEstimate(
            flops=6 * n_elems,  # 2 subs + 2 abs + ~2 adds per element
            transcendentals=0,
            bytes_accessed=int(n_elems * itemsize) + 4 * num_blocks,
        ),
    )(xf)

    # Tiny tree-sum of per-block partials + single strength scale.
    loss = jnp.float32(strength) * jnp.sum(partials)
    return x, loss


def _tv_loss_ref(x, strength):
    x = x.astype(jnp.float32)
    x_diff = x[:, :, 1:, :] - x[:, :, :-1, :]
    y_diff = x[:, :, :, 1:] - x[:, :, :, :-1]
    return strength * (jnp.sum(jnp.abs(x_diff)) + jnp.sum(jnp.abs(y_diff)))


if __name__ == "__main__":
    strength = 0.5  # deterministic "parameter" from __init__
    key = jax.random.PRNGKey(0)

    # Primary check: small shape implied by the module, exact grid fit.
    x = jax.random.normal(key, (2, 4, 16, 16), dtype=jnp.float32)
    out, loss = tv_loss_forward(x, strength)
    out = jax.block_until_ready(out)
    loss = jax.block_until_ready(loss)

    assert out.shape == x.shape and out.dtype == x.dtype
    assert bool(jnp.all(out == x))
    ref = _tv_loss_ref(x, strength)
    assert bool(jnp.allclose(loss, ref, rtol=1e-5, atol=1e-5)), (loss, ref)

    # Secondary check: bc not a multiple of 8/block_rows -> exercises the
    # in-kernel tail-row masking path (no wrapper-side pad).
    x2 = jax.random.normal(jax.random.PRNGKey(1), (3, 5, 16, 16),
                           dtype=jnp.float32)
    _, loss2 = tv_loss_forward(x2, strength)
    loss2 = jax.block_until_ready(loss2)
    ref2 = _tv_loss_ref(x2, strength)
    assert bool(jnp.allclose(loss2, ref2, rtol=1e-5, atol=1e-5)), (loss2, ref2)

    print("KERNEL_OK")
</pallas_src>

<mosaic_0001>
module attributes {stable_mosaic.version = 11 : i64} {
  func.func @_tv_loss_kernel(%arg0: i32, %arg1: memref<8x256xf32, #tpu.memory_space<vmem>>, %arg2: memref<1x1xf32, #tpu.memory_space<smem>>) attributes {dimension_semantics = [#tpu.dimension_semantics<parallel>], iteration_bounds = array<i64: 1>, scalar_prefetch = 0 : i64, scratch_operands = 0 : i64, tpu.core_type = #tpu.core_type<tc>, window_params = [{transform_indices = @transform_0, window_bounds = array<i64: 8, 256>}, {transform_indices = @transform_1, window_bounds = array<i64: 1, 1>}]} {
    %c0 = arith.constant 0 : index
    %c0_0 = arith.constant 0 : index
    %0 = vector.load %arg1[%c0, %c0_0] : memref<8x256xf32, #tpu.memory_space<vmem>>, vector<8x256xf32>
    %1 = tpu.iota {dimensions = array<i32: 1>} : vector<1x256xi32>
    %c16_i32 = arith.constant 16 : i32
    %c0_i32 = arith.constant 0 : i32
    %2 = arith.cmpi eq, %c16_i32, %c0_i32 : i32
    %c1_i32 = arith.constant 1 : i32
    %3 = arith.select %2, %c1_i32, %c16_i32 : i32
    %4 = vector.broadcast %3 : i32 to vector<1x256xi32>
    %5 = arith.remsi %1, %4 : vector<1x256xi32>
    %c0_i32_1 = arith.constant 0 : i32
    %6 = vector.broadcast %c0_i32_1 : i32 to vector<1x256xi32>
    %7 = arith.cmpi ne, %5, %6 : vector<1x256xi32>
    %c0_i32_2 = arith.constant 0 : i32
    %8 = vector.broadcast %c0_i32_2 : i32 to vector<1x256xi32>
    %9 = arith.cmpi slt, %5, %8 : vector<1x256xi32>
    %c0_i32_3 = arith.constant 0 : i32
    %10 = arith.cmpi slt, %3, %c0_i32_3 : i32
    %11 = vector.broadcast %10 : i1 to vector<1x256xi1>
    %12 = vector.broadcast %11 : vector<1x256xi1> to vector<1x256xi1>
    %13 = arith.xori %9, %12 : vector<1x256xi1>
    %14 = arith.andi %13, %7 : vector<1x256xi1>
    %15 = vector.broadcast %3 : i32 to vector<1x256xi32>
    %16 = arith.addi %5, %15 : vector<1x256xi32>
    %17 = arith.select %14, %16, %5 : vector<1x256xi1>, vector<1x256xi32>
    %c0_i32_4 = arith.constant 0 : i32
    %18 = vector.broadcast %c0_i32_4 : i32 to vector<1x256xi32>
    %19 = arith.cmpi ne, %17, %18 : vector<1x256xi32>
    %c16_i32_5 = arith.constant 16 : i32
    %20 = vector.broadcast %c16_i32_5 : i32 to vector<1x256xi32>
    %21 = arith.cmpi sge, %1, %20 : vector<1x256xi32>
    %c1_i32_6 = arith.constant 1 : i32
    %22 = tpu.dynamic_rotate %0 by %c1_i32_6 dim 1 : vector<8x256xf32>, i32 -> vector<8x256xf32>
    %c16_i32_7 = arith.constant 16 : i32
    %23 = tpu.dynamic_rotate %0 by %c16_i32_7 dim 1 : vector<8x256xf32>, i32 -> vector<8x256xf32>
    %24 = arith.subf %0, %22 : vector<8x256xf32>
    %25 = math.absf %24 : vector<8x256xf32>
    %cst = arith.constant 0.000000e+00 : f32
    %26 = vector.shape_cast %19 : vector<1x256xi1> to vector<1x256xi1>
    %27 = vector.broadcast %26 : vector<1x256xi1> to vector<8x256xi1>
    %28 = vector.broadcast %cst : f32 to vector<8x256xf32>
    %29 = arith.select %27, %25, %28 : vector<8x256xi1>, vector<8x256xf32>
    %30 = arith.subf %0, %23 : vector<8x256xf32>
    %31 = math.absf %30 : vector<8x256xf32>
    %cst_8 = arith.constant 0.000000e+00 : f32
    %32 = vector.shape_cast %21 : vector<1x256xi1> to vector<1x256xi1>
    %33 = vector.broadcast %32 : vector<1x256xi1> to vector<8x256xi1>
    %34 = vector.broadcast %cst_8 : f32 to vector<8x256xf32>
    %35 = arith.select %33, %31, %34 : vector<8x256xi1>, vector<8x256xf32>
    %36 = arith.addf %29, %35 : vector<8x256xf32>
    %37 = vector.shape_cast %36 : vector<8x256xf32> to vector<1x8x256xf32>
    %cst_9 = arith.constant dense<0.000000e+00> : vector<1xf32>
    %38 = vector.multi_reduction <add>, %37, %cst_9 [1, 2] : vector<1x8x256xf32> to vector<1xf32>
    %39 = vector.shape_cast %38 : vector<1xf32> to vector<1x1x1xf32>
    %40 = vector.extract %39[0, 0, 0] : f32 from vector<1x1x1xf32>
    %c0_10 = arith.constant 0 : index
    %c0_11 = arith.constant 0 : index
    %41 = memref.load %arg2[%c0_10, %c0_11] : memref<1x1xf32, #tpu.memory_space<smem>>
    memref.store %40, %arg2[%c0_10, %c0_11] : memref<1x1xf32, #tpu.memory_space<smem>>
    return
  }
  func.func @transform_0(%arg0: i32) -> (i32, i32) {
    %c0_i32 = arith.constant 0 : i32
    %c0_i32_0 = arith.constant 0 : i32
    return %arg0, %c0_i32 : i32, i32
  }
  func.func @transform_1(%arg0: i32) -> (i32, i32) {
    %c0_i32 = arith.constant 0 : i32
    %c0_i32_0 = arith.constant 0 : i32
    return %arg0, %c0_i32 : i32, i32
  }
}

</mosaic_0001>

<bundles_post_ra>
// kernel: tpu_custom_call.1
= control target key start
LH: loop header
LB: loop body
LE: loop exit
PB: predicated region body
PF: predicated region fallthrough
CT: control target
= control target key end

     0   :  { %6 = vsyncpa [#allocation3], 0  ;;  %s186_s0 = inlined_call_operand.hbm [shape: f32[8,256], index: 0, kind: input, shape index: {}]   ;;  %s187_s1 = inlined_call_operand.hbm [shape: f32[1,1], index: 1, kind: output, shape index: {}]  }
   0x1   :  { %7 = vsyncpa [#allocation4], 0  ;;  %s13_s8 = sshll.u32 %s186_s0, 4  ;;  %s166_s9 = smov [#allocation2]   ;;  %s14_s8 = int_to_ptr.hbm [resolvable:$true] %s13_s8 }
   0x2   :  { %s15_s10 = sshll.u32 %s166_s9, 4  ;;  %s16_s10 = int_to_ptr.vmem [resolvable:$true] %s15_s10 }
   0x3   :  { %18 = dma.hbm_to_vmem [thread:$0]  %s14_s8, 256, %s16_s10, [#allocation3]  }
   0x4   :  { %162 = dma.done.wait [#allocation3], 256  }
   0x5   :  { %163 = vsyncadd [#allocation3], 4294967040  ;;  %v23_v0 = vld [vmem:[#allocation2] sm:$0xff]  ;;  %s167_s11 = smov 16   ;;  %s168_s12 = smov 1   ;;  %v24_v1 = vld [vmem:[#allocation2 + $0x8] sm:$0xff]  ;;  %v25_v2 = vlaneseq }
   0x6   :  { %63 = vrot.lane.b32.xlu1 %v23_v0, %s167_s11  ;;  %56 = vrot.lane.b32.xlu0 %v23_v0, %s168_s12  ;;  %s109_s14 = sshll.u32 %s187_s1, 4  ;;  %s169_s16 = smov [#allocation5]   ;;  %s110_s14 = int_to_ptr.hbm [resolvable:$true] %s109_s14 }
   0x7   :  { %v26_v3 = vand.u32 127, %v25_v2 }
   0x9   :  { %v27_v6 = vadd.s32 128, %v26_v3  ;;  %vm67_vm0 = vcmp.lt.s32.totalorder %v26_v3, 16  ;;  %vm60_vm1 = vcmp.lt.s32.totalorder %v26_v3, 1  ;;  %v32_v7 = vand.u32 15, %v26_v3 }
   0xa   :  { %vm54_vm4 = vcmp.ge.s32.totalorder %v26_v3, 16 }
   0xb   :  { %v39_v8 = vand.u32 15, %v27_v6  ;;  %vm52_vm2 = vcmp.ne.s32.totalorder %v32_v7, 0 }
   0xd   :  { %vm53_vm3 = vcmp.ne.s32.totalorder %v39_v8, 0 }
   0xe   :  { %65 = vrot.lane.b32.xlu1 %v24_v1, %s167_s11  ;;  %58 = vrot.lane.b32.xlu0 %v24_v1, %s168_s12 }
  0x78   :  { %v64_v4 = vpop.permute.xlu1 %63  ;;  %v57_v5 = vpop.permute.xlu0 %56 }
  0x80   :  { %v66_v9 = vpop.permute.xlu1 %65  ;;  %v59_v10 = vpop.permute.xlu0 %58 }
  0x81   :  { %v68_v11 = vsel %vm67_vm0, %v64_v4, %v66_v9  ;;  %v69_v12 = vsel %vm67_vm0, %v66_v9, %v64_v4  ;;  %v61_v13 = vsel %vm60_vm1, %v57_v5, %v59_v10  ;;  %v62_v14 = vsel %vm60_vm1, %v59_v10, %v57_v5 }
  0x82   :  { %v80_v15 = vsub.f32 %v23_v0, %v69_v12  ;;  %v81_v16 = vsub.f32 %v24_v1, %v68_v11  ;;  %v70_v17 = vsub.f32 %v23_v0, %v62_v14  ;;  %v71_v18 = vsub.f32 %v24_v1, %v61_v13 }
  0x84   :  { %v82_v19 = vand.u32 2147483647, %v80_v15  ;;  %v83_v20 = vand.u32 2147483647, %v81_v16  ;;  %v72_v21 = vand.u32 2147483647, %v70_v17 }
  0x85   :  { %v73_v22 = vand.u32 2147483647, %v71_v18 }
  0x86   :  { %v78_v23 = vsel %vm52_vm2, %v72_v21, 0.0  ;;  %v88_v24 = vsel %vm54_vm4, %v82_v19, 0.0 }
  0x87   :  { %v79_v25 = vsel %vm53_vm3, %v73_v22, 0.0  ;;  %v90_v26 = vadd.f32 %v88_v24, %v78_v23 }
  0x88   :  { %v91_v27 = vadd.f32 %v83_v20, %v79_v25 }
  0x8a   :  { %v92_v28 = vadd.f32 %v91_v27, %v90_v26 }
  0x8c   :  { %93 = vadd.xlane.f32.xlu2 %v92_v28 }
  0xff   :  { %v94_v29 = vpop.xlane.xlu2 %93 }
 0x100   :  { %v95_v30 = vrot.slane %v94_v29, 4 }
 0x102   :  { %v96_v31 = vadd.f32 %v95_v30, %v94_v29 }
 0x104   :  { %v97_v32 = vrot.slane %v96_v31, 2 }
 0x106   :  { %v98_v33 = vadd.f32 %v97_v32, %v96_v31 }
 0x108   :  { %v99_v34 = vrot.slane %v98_v33, 1 }
 0x10a   :  { %v100_v35 = vadd.f32 %v99_v34, %v98_v33 }
 0x10c   :  { %120 = vpush %v100_v35 }
 0x13d   :  { %s121_s15 = spop %120 }
 0x13e   :  { %103 = sst [smem:[#allocation5]] %s121_s15 }
 0x13f   :  { %112 = dma.smem_to_hbm %s169_s16, 16, %s110_s14, [#allocation4]  }
 0x140   :  { %164 = dma.done.wait [#allocation4], 16  }
 0x141   :  { %165 = vsyncadd [#allocation4], 4294967280 }
 0x142   :  { %117 = sfence }
 0x143   :  { %118 = vsyncpa [#allocation3], 1 }
 0x144   :  { %119 = vsyncpa [#allocation4], 1 }

</bundles_post_ra>
